<compile_context>
chip_gen: v7x
topology: tpu7x:2x2x1
jax: 0.10.0
libtpu: 0.0.40
codegen_flags: <defaults>
</compile_context>

<pallas_src>
import numpy as np
import jax
import jax.numpy as jnp
from jax import lax
from jax.experimental import pallas as pl
from jax.experimental.pallas import tpu as pltpu

_SLAB_W = 128  # lane-dense packed scalar-output width (one unmasked store)


def _dicos_loss_kernel(score_ref, ct_ref, cm_ref, ns_ref, ne_ref, nm_ref,
                       svp_ref, sp_ref, ep_ref, uinfo_ref, slab_ref):
    f32 = jnp.float32
    i32 = jnp.int32

    score = score_ref[...]                                        # [B, S, H]
    B, S, H = score.shape
    U, V = svp_ref.shape
    L = sp_ref.shape[-1]

    # ---- argmax over history (first maximal index); H sits on the lane axis ----
    m = jnp.max(score, axis=-1, keepdims=True)                    # [B, S, 1]
    iota_h = lax.broadcasted_iota(i32, (B, S, H), 2)
    idx = jnp.min(jnp.where(score == m, iota_h, H), axis=-1)      # [B, S] int32

    # ---- fused history gather in native [B, H, S] layout: one shared mask, integer domain ----
    iota_bh = lax.broadcasted_iota(i32, (B, H, S), 1)
    hist_mask = iota_bh == idx[:, None, :]                        # [B, H, S] bool

    def gather(ref):
        x = ref[...]                                              # narrow int dtype (int16/int8)
        sel = jnp.where(hist_mask, x, jnp.zeros_like(x))
        return jnp.sum(sel.astype(i32), axis=1)                   # [B, S] int32 (exact: one-hot)

    # chunk order: cls-target | start | end | cls-mask | ext-mask    -> [B, 5*S]
    g_cat = jnp.concatenate([gather(ct_ref), gather(ns_ref), gather(ne_ref),
                             gather(cm_ref), gather(nm_ref)], axis=1).astype(f32)

    # ---- per-update-row pick: contract over B with ONE small matmul, then masked lane reduce ----
    uinfo = uinfo_ref[...]                                        # [U, 4] int32: (b, s, row_valid, 0)
    ub = uinfo[:, 0:1]
    us = uinfo[:, 1:2]
    rv = uinfo[:, 2:3]
    sel_b = (lax.broadcasted_iota(i32, (U, B), 1) == ub).astype(f32)     # [U, B]
    sel_s = (lax.broadcasted_iota(i32, (U, S), 1) == us).astype(f32)     # [U, S]
    t1 = jnp.dot(sel_b, g_cat, preferred_element_type=f32)               # [U, 5*S]

    def pick(q):                                                  # masked lane reduce over S
        return jnp.sum(t1[:, q * S:(q + 1) * S] * sel_s, axis=1, keepdims=True)   # [U, 1]

    tgt_cls = jnp.round(pick(0)).astype(i32)                      # exact small ints -> round is safe
    tgt_st = jnp.round(pick(1)).astype(i32)
    tgt_en = jnp.round(pick(2)).astype(i32)
    cls_m = jnp.round(pick(3)).astype(i32)
    ext_m = jnp.round(pick(4)).astype(i32)

    # ---- pick the target-class / target-position probability per row ----
    iota_v = lax.broadcasted_iota(i32, (U, V), 1)
    iota_l = lax.broadcasted_iota(i32, (U, L), 1)
    p_cls = jnp.sum(jnp.where(iota_v == tgt_cls, svp_ref[...], 0.0), axis=1, keepdims=True)  # [U, 1]
    p_st = jnp.sum(jnp.where(iota_l == tgt_st, sp_ref[...], 0.0), axis=1, keepdims=True)
    p_en = jnp.sum(jnp.where(iota_l == tgt_en, ep_ref[...], 0.0), axis=1, keepdims=True)

    # ---- masked NLL (mask value 2 excluded; padded rows guarded by row_valid) ----
    rv_ok = rv > 0
    cls_valid = ((cls_m == 1) & rv_ok).astype(f32)                # [U, 1]
    ext_valid = ((ext_m == 1) & rv_ok).astype(f32)

    def masked_nll(p, valid):                                     # -> [1, 1]
        cnt = jnp.sum(valid, axis=0, keepdims=True)
        nll = jnp.sum(valid * (-jnp.log(p + 1e-5)), axis=0, keepdims=True)
        return jnp.where(cnt > 0, nll / jnp.maximum(cnt, 1.0), jnp.zeros_like(nll))

    loss = (masked_nll(p_cls, cls_valid)
            + masked_nll(p_st, ext_valid)
            + masked_nll(p_en, ext_valid))                        # [1, 1]
    loss_col = jnp.zeros((U, 1), f32) + loss                      # broadcast to [U, 1]

    # ---- single lane-dense packed output slab (one unmasked store) ----
    cols = jnp.concatenate([tgt_cls.astype(f32), tgt_st.astype(f32), tgt_en.astype(f32),
                            cls_valid, ext_valid, loss_col], axis=1)          # [U, 6]
    slab_ref[...] = jnp.concatenate([cols, jnp.zeros((U, _SLAB_W - 6), f32)], axis=1)


def dicos_generator_loss(score, update_slot, startProb, endProb, slotValueProb,
                         cata_target, cate_mask, noncate_start, noncate_end, noncate_mask,
                         update_value=1):
    B, S, H = score.shape
    U, S2, V = slotValueProb.shape
    L = startProb.shape[-1]
    assert S2 == S and endProb.shape == startProb.shape
    # int16 narrowing of targets is only safe below 32768 classes / positions (explicit, per review).
    assert V < 32768 and L < 32768, "int16 target narrowing requires maxSlotValue, pad_size < 32768"
    # masks take values in {0,1,2} per the DiCoS spec -> int8 narrowing is safe for them.

    # glue: row-major positions of "update" slots (matches torch.masked_select ordering).
    flat = (update_slot.reshape(-1) == update_value)
    pos = jnp.nonzero(flat, size=U)[0].astype(jnp.int32)
    num_upd = jnp.sum(flat.astype(jnp.int32))
    row_valid = (jnp.arange(U, dtype=jnp.int32) < num_upd).astype(jnp.int32)   # guards padded rows
    b_idx = pos // S
    s_idx = pos % S
    uinfo = jnp.stack([b_idx, s_idx, row_valid, jnp.zeros_like(pos)], axis=1)  # [U, 4]

    # --- S x redundancy fix: keep ONLY the "diagonal" slot row of each probability tensor ---
    # svp_diag[u] = slotValueProb[u, s_u, :]  (padded rows carry garbage; filter by the valid flags)
    gidx = s_idx[:, None, None]
    svp_diag = jnp.take_along_axis(slotValueProb.astype(jnp.float32), gidx, axis=1)[:, 0, :]  # [U, V]
    sp_diag = jnp.take_along_axis(startProb.astype(jnp.float32), gidx, axis=1)[:, 0, :]       # [U, L]
    ep_diag = jnp.take_along_axis(endProb.astype(jnp.float32), gidx, axis=1)[:, 0, :]         # [U, L]

    # glue: ONLY dtype narrowing -- no transposes; native layouts go straight into the kernel.
    args = (
        score.astype(jnp.float32),                    # [B, S, H]
        cata_target.astype(jnp.int16),                # [B, H, S]
        cate_mask.astype(jnp.int8),                   # [B, H, S]
        noncate_start.astype(jnp.int16),
        noncate_end.astype(jnp.int16),
        noncate_mask.astype(jnp.int8),
        svp_diag,                                     # [U, V]
        sp_diag,                                      # [U, L]
        ep_diag,                                      # [U, L]
        uinfo.astype(jnp.int32),                      # [U, 4]
    )

    # --- generation-aware VMEM budget (correct sublane packing for narrow dtypes) ---
    pad = lambda x, m: -(-x // m) * m
    est = (B * pad(S, 8) * pad(H, 128) * 4                           # score
           + 3 * B * pad(H, 16) * pad(S, 128) * 2                    # int16 targets: sublane pad 16
           + 2 * B * pad(H, 32) * pad(S, 128) * 1                    # int8 masks:   sublane pad 32
           + pad(U, 8) * (pad(V, 128) + 2 * pad(L, 128)) * 4         # diag probs
           + pad(U, 8) * 128 * 4                                     # uinfo (lane-padded)
           + pad(U, 8) * _SLAB_W * 4)                                # output slab
    try:
        capacity = int(pltpu.get_tpu_info().vmem_capacity_bytes)
    except Exception:
        capacity = 64 * 2 ** 20                                      # conservative (v7x per-core)
    budget = int(1.3 * est) + (1 << 20)                              # single grid step -> no double-buffer
    vmem_limit = None
    if budget > 16 * 2 ** 20:                                        # v5e scoped default is 16 MiB
        vmem_limit = min(budget, int(0.75 * capacity))               # leave compiler-scratch headroom

    cost = pl.CostEstimate(
        flops=(6 * B * S * H                  # argmax + first-max select
               + 5 * B * H * S                # history gathers
               + 2 * U * B * 5 * S            # sel_b contraction
               + 10 * U * S                   # masked lane reduces
               + 3 * U * (V + 2 * L) // 3 + U * (V + 2 * L)),  # prob picks
        transcendentals=3 * U,
        bytes_accessed=(B * S * H * 4 + B * H * S * (3 * 2 + 2 * 1)
                        + U * (V + 2 * L) * 4 + U * 4 * 4 + U * _SLAB_W * 4))

    vmem = pl.BlockSpec(memory_space=pltpu.MemorySpace.VMEM)
    slab = pl.pallas_call(
        _dicos_loss_kernel,
        out_shape=jax.ShapeDtypeStruct((U, _SLAB_W), jnp.float32),
        in_specs=[vmem] * len(args),
        out_specs=vmem,
        compiler_params=pltpu.CompilerParams(vmem_limit_bytes=vmem_limit),
        cost_estimate=cost,
    )(*args)

    loss = slab[0, 5]
    tgt_cls = slab[:, 0].astype(jnp.int32)
    tgt_st = slab[:, 1].astype(jnp.int32)
    tgt_en = slab[:, 2].astype(jnp.int32)
    cls_valid = slab[:, 3].astype(jnp.int32)
    ext_valid = slab[:, 4].astype(jnp.int32)
    return (loss, svp_diag, tgt_cls, cls_valid, sp_diag, ep_diag, tgt_st, tgt_en, ext_valid)


def _ref_forward(score, update_slot, startProb, endProb, slotValueProb,
                 cata_target, cate_mask, noncate_start, noncate_end, noncate_mask,
                 slotTypeNum, maxSlotValue, pad_size, update_value=1):
    """Numpy replication of the PyTorch forward (reference)."""
    score = np.asarray(score)
    S = slotTypeNum
    idx = score.argmax(-1)                                   # [B, S]
    idx_exp = np.repeat(idx[:, :, None], S, axis=2)          # [B, S, S]
    g = lambda X: np.take_along_axis(np.asarray(X), idx_exp, axis=1)
    ct, cm, ns, ne, nm = (g(cata_target), g(cate_mask),
                          g(noncate_start), g(noncate_end), g(noncate_mask))
    eye = np.eye(S)
    cm = cm * eye[None]
    nm = nm * eye[None]
    upd = np.repeat(np.asarray(update_slot)[:, :, None], S, axis=2)
    sel = upd == update_value
    rs = lambda X: X[sel].reshape(-1, S)
    ct, cm, ns, ne, nm = map(rs, (ct, cm, ns, ne, nm))
    cm = cm.reshape(-1)
    nm = nm.reshape(-1)
    svp = np.asarray(slotValueProb).reshape(-1, maxSlotValue)
    ct = ct.reshape(-1)
    sp = np.asarray(startProb).reshape(-1, pad_size)
    ns = ns.reshape(-1)
    ep = np.asarray(endProb).reshape(-1, pad_size)
    ne = ne.reshape(-1)

    def mnll(pred, target, mask):
        msel = mask == 1
        p = pred[msel]
        tgt = target[msel].astype(int)
        if p.shape[0] == 0:
            return 0.0, p, tgt
        lp = np.log(p + 1e-5)
        return float(-lp[np.arange(p.shape[0]), tgt].mean()), p, tgt

    cls_loss, svp_sel, ct_sel = mnll(svp, ct, cm)
    st_loss, sp_sel, ns_sel = mnll(sp, ns, nm)
    en_loss, ep_sel, ne_sel = mnll(ep, ne, nm)
    return (cls_loss + st_loss + en_loss, svp_sel, ct_sel, sp_sel, ns_sel, ep_sel, ne_sel)


if __name__ == "__main__":
    # small synthetic config: batch=2, slotType=4, maxHistory=3, maxSlotValue=6, pad_size(seqLen)=16
    B, S, H, V, L = 2, 4, 3, 6, 16

    update_slot = jnp.array([[1, 0, 1, 1],
                             [0, 1, 1, 0]], dtype=jnp.int32)     # U = 5 "update" rows
    U = int(np.asarray(update_slot).sum())

    key = jax.random.PRNGKey(0)
    ks = jax.random.split(key, 9)
    score = jax.random.normal(ks[0], (B, S, H), dtype=jnp.float32)
    slotValueProb = jax.nn.softmax(jax.random.normal(ks[1], (U, S, V)), axis=-1)
    startProb = jax.nn.softmax(jax.random.normal(ks[2], (U, S, L)), axis=-1)
    endProb = jax.nn.softmax(jax.random.normal(ks[3], (U, S, L)), axis=-1)
    cata_target = jax.random.randint(ks[4], (B, H, S), 0, V, dtype=jnp.int32)
    cate_mask = jax.random.randint(ks[5], (B, H, S), 0, 2, dtype=jnp.int32)
    noncate_start = jax.random.randint(ks[6], (B, H, S), 0, L, dtype=jnp.int32)
    noncate_end = jax.random.randint(ks[7], (B, H, S), 0, L, dtype=jnp.int32)
    noncate_mask = jax.random.randint(ks[8], (B, H, S), 0, 3, dtype=jnp.int32)

    outs = dicos_generator_loss(score, update_slot, startProb, endProb, slotValueProb,
                                cata_target, cate_mask, noncate_start, noncate_end, noncate_mask)
    outs = jax.block_until_ready(outs)
    (loss, svp_diag, tgt_cls, cls_valid, sp_diag, ep_diag, tgt_st, tgt_en, ext_valid) = outs
    loss = float(np.asarray(loss))

    # host-side reconstruction of the dynamically-shaped torch outputs (masked_select)
    cls_sel = np.asarray(cls_valid).astype(bool)
    ext_sel = np.asarray(ext_valid).astype(bool)
    k_svp_sel = np.asarray(svp_diag)[cls_sel]
    k_ct_sel = np.asarray(tgt_cls)[cls_sel]
    k_sp_sel = np.asarray(sp_diag)[ext_sel]
    k_ns_sel = np.asarray(tgt_st)[ext_sel]
    k_ep_sel = np.asarray(ep_diag)[ext_sel]
    k_ne_sel = np.asarray(tgt_en)[ext_sel]

    (ref_loss, svp_sel, ct_sel, sp_sel, ns_sel, ep_sel, ne_sel) = _ref_forward(
        score, update_slot, startProb, endProb, slotValueProb,
        cata_target, cate_mask, noncate_start, noncate_end, noncate_mask,
        slotTypeNum=S, maxSlotValue=V, pad_size=L)

    assert np.allclose(loss, ref_loss, atol=1e-4), (loss, ref_loss)
    assert k_svp_sel.shape == svp_sel.shape and np.allclose(k_svp_sel, svp_sel, atol=1e-5)
    assert np.array_equal(k_ct_sel, ct_sel)
    assert k_sp_sel.shape == sp_sel.shape and np.allclose(k_sp_sel, sp_sel, atol=1e-5)
    assert np.array_equal(k_ns_sel, ns_sel)
    assert k_ep_sel.shape == ep_sel.shape and np.allclose(k_ep_sel, ep_sel, atol=1e-5)
    assert np.array_equal(k_ne_sel, ne_sel)

    print("KERNEL_OK")
</pallas_src>

<mosaic_0001>
module attributes {stable_mosaic.version = 11 : i64} {
  func.func @_dicos_loss_kernel(%arg0: memref<2x4x3xf32, #tpu.memory_space<vmem>>, %arg1: memref<2x3x4xi16, #tpu.memory_space<vmem>>, %arg2: memref<2x3x4xi8, #tpu.memory_space<vmem>>, %arg3: memref<2x3x4xi16, #tpu.memory_space<vmem>>, %arg4: memref<2x3x4xi16, #tpu.memory_space<vmem>>, %arg5: memref<2x3x4xi8, #tpu.memory_space<vmem>>, %arg6: memref<5x6xf32, #tpu.memory_space<vmem>>, %arg7: memref<5x16xf32, #tpu.memory_space<vmem>>, %arg8: memref<5x16xf32, #tpu.memory_space<vmem>>, %arg9: memref<5x4xi32, #tpu.memory_space<vmem>>, %arg10: memref<5x128xf32, #tpu.memory_space<vmem>>) attributes {dimension_semantics = [], scalar_prefetch = 0 : i64, scratch_operands = 0 : i64, tpu.core_type = #tpu.core_type<tc>} {
    %c0 = arith.constant 0 : index
    %c0_0 = arith.constant 0 : index
    %c0_1 = arith.constant 0 : index
    %0 = vector.load %arg0[%c0, %c0_0, %c0_1] : memref<2x4x3xf32, #tpu.memory_space<vmem>>, vector<2x4x3xf32>
    %cst = arith.constant dense<0xFF800000> : vector<2x4xf32>
    %1 = vector.multi_reduction <maximumf>, %0, %cst [2] : vector<2x4x3xf32> to vector<2x4xf32>
    %2 = vector.shape_cast %1 : vector<2x4xf32> to vector<2x4x1xf32>
    %3 = tpu.iota {dimensions = array<i32: 2>} : vector<2x4x3xi32>
    %4 = vector.broadcast %2 : vector<2x4x1xf32> to vector<2x4x3xf32>
    %5 = arith.cmpf oeq, %0, %4 : vector<2x4x3xf32>
    %c3_i32 = arith.constant 3 : i32
    %6 = vector.broadcast %c3_i32 : i32 to vector<2x4x3xi32>
    %7 = arith.select %5, %3, %6 : vector<2x4x3xi1>, vector<2x4x3xi32>
    %cst_2 = arith.constant dense<2147483647> : vector<2x4xi32>
    %8 = vector.multi_reduction <minsi>, %7, %cst_2 [2] : vector<2x4x3xi32> to vector<2x4xi32>
    %9 = tpu.iota {dimensions = array<i32: 1>} : vector<2x3x4xi32>
    %10 = vector.shape_cast %8 : vector<2x4xi32> to vector<2x1x4xi32>
    %11 = vector.broadcast %10 : vector<2x1x4xi32> to vector<2x3x4xi32>
    %12 = arith.cmpi eq, %9, %11 : vector<2x3x4xi32>
    %c0_3 = arith.constant 0 : index
    %c0_4 = arith.constant 0 : index
    %c0_5 = arith.constant 0 : index
    %13 = vector.load %arg1[%c0_3, %c0_4, %c0_5] : memref<2x3x4xi16, #tpu.memory_space<vmem>>, vector<2x3x4xi16>
    %c0_i16 = arith.constant 0 : i16
    %14 = vector.broadcast %c0_i16 : i16 to vector<2x3x4xi16>
    %15 = arith.select %12, %13, %14 : vector<2x3x4xi1>, vector<2x3x4xi16>
    %16 = arith.extsi %15 : vector<2x3x4xi16> to vector<2x3x4xi32>
    %cst_6 = arith.constant dense<0> : vector<2x4xi32>
    %17 = vector.multi_reduction <add>, %16, %cst_6 [1] : vector<2x3x4xi32> to vector<2x4xi32>
    %c0_7 = arith.constant 0 : index
    %c0_8 = arith.constant 0 : index
    %c0_9 = arith.constant 0 : index
    %18 = vector.load %arg3[%c0_7, %c0_8, %c0_9] : memref<2x3x4xi16, #tpu.memory_space<vmem>>, vector<2x3x4xi16>
    %c0_i16_10 = arith.constant 0 : i16
    %19 = vector.broadcast %c0_i16_10 : i16 to vector<2x3x4xi16>
    %20 = arith.select %12, %18, %19 : vector<2x3x4xi1>, vector<2x3x4xi16>
    %21 = arith.extsi %20 : vector<2x3x4xi16> to vector<2x3x4xi32>
    %cst_11 = arith.constant dense<0> : vector<2x4xi32>
    %22 = vector.multi_reduction <add>, %21, %cst_11 [1] : vector<2x3x4xi32> to vector<2x4xi32>
    %c0_12 = arith.constant 0 : index
    %c0_13 = arith.constant 0 : index
    %c0_14 = arith.constant 0 : index
    %23 = vector.load %arg4[%c0_12, %c0_13, %c0_14] : memref<2x3x4xi16, #tpu.memory_space<vmem>>, vector<2x3x4xi16>
    %c0_i16_15 = arith.constant 0 : i16
    %24 = vector.broadcast %c0_i16_15 : i16 to vector<2x3x4xi16>
    %25 = arith.select %12, %23, %24 : vector<2x3x4xi1>, vector<2x3x4xi16>
    %26 = arith.extsi %25 : vector<2x3x4xi16> to vector<2x3x4xi32>
    %cst_16 = arith.constant dense<0> : vector<2x4xi32>
    %27 = vector.multi_reduction <add>, %26, %cst_16 [1] : vector<2x3x4xi32> to vector<2x4xi32>
    %c0_17 = arith.constant 0 : index
    %c0_18 = arith.constant 0 : index
    %c0_19 = arith.constant 0 : index
    %28 = vector.load %arg2[%c0_17, %c0_18, %c0_19] : memref<2x3x4xi8, #tpu.memory_space<vmem>>, vector<2x3x4xi8>
    %c0_i8 = arith.constant 0 : i8
    %29 = vector.broadcast %c0_i8 : i8 to vector<2x3x4xi8>
    %30 = arith.select %12, %28, %29 : vector<2x3x4xi1>, vector<2x3x4xi8>
    %31 = arith.extsi %30 : vector<2x3x4xi8> to vector<2x3x4xi32>
    %cst_20 = arith.constant dense<0> : vector<2x4xi32>
    %32 = vector.multi_reduction <add>, %31, %cst_20 [1] : vector<2x3x4xi32> to vector<2x4xi32>
    %c0_21 = arith.constant 0 : index
    %c0_22 = arith.constant 0 : index
    %c0_23 = arith.constant 0 : index
    %33 = vector.load %arg5[%c0_21, %c0_22, %c0_23] : memref<2x3x4xi8, #tpu.memory_space<vmem>>, vector<2x3x4xi8>
    %c0_i8_24 = arith.constant 0 : i8
    %34 = vector.broadcast %c0_i8_24 : i8 to vector<2x3x4xi8>
    %35 = arith.select %12, %33, %34 : vector<2x3x4xi1>, vector<2x3x4xi8>
    %36 = arith.extsi %35 : vector<2x3x4xi8> to vector<2x3x4xi32>
    %cst_25 = arith.constant dense<0> : vector<2x4xi32>
    %37 = vector.multi_reduction <add>, %36, %cst_25 [1] : vector<2x3x4xi32> to vector<2x4xi32>
    %38 = tpu.concatenate %17, %22, %27, %32, %37 in 1 : vector<2x4xi32>, vector<2x4xi32>, vector<2x4xi32>, vector<2x4xi32>, vector<2x4xi32> -> vector<2x20xi32>
    %39 = arith.sitofp %38 : vector<2x20xi32> to vector<2x20xf32>
    %c0_26 = arith.constant 0 : index
    %c0_27 = arith.constant 0 : index
    %40 = vector.load %arg9[%c0_26, %c0_27] : memref<5x4xi32, #tpu.memory_space<vmem>>, vector<5x4xi32>
    %41 = vector.extract_strided_slice %40 {offsets = [0, 0], sizes = [5, 1], strides = [1, 1]} : vector<5x4xi32> to vector<5x1xi32>
    %42 = vector.extract_strided_slice %40 {offsets = [0, 1], sizes = [5, 1], strides = [1, 1]} : vector<5x4xi32> to vector<5x1xi32>
    %43 = vector.extract_strided_slice %40 {offsets = [0, 2], sizes = [5, 1], strides = [1, 1]} : vector<5x4xi32> to vector<5x1xi32>
    %44 = tpu.iota {dimensions = array<i32: 1>} : vector<5x2xi32>
    %45 = vector.broadcast %41 : vector<5x1xi32> to vector<5x2xi32>
    %46 = arith.cmpi eq, %44, %45 : vector<5x2xi32>
    %47 = arith.extui %46 : vector<5x2xi1> to vector<5x2xi32>
    %48 = arith.sitofp %47 : vector<5x2xi32> to vector<5x2xf32>
    %49 = tpu.iota {dimensions = array<i32: 1>} : vector<5x4xi32>
    %50 = vector.broadcast %42 : vector<5x1xi32> to vector<5x4xi32>
    %51 = arith.cmpi eq, %49, %50 : vector<5x4xi32>
    %52 = arith.extui %51 : vector<5x4xi1> to vector<5x4xi32>
    %53 = arith.sitofp %52 : vector<5x4xi32> to vector<5x4xf32>
    %cst_28 = arith.constant dense<0.000000e+00> : vector<5x20xf32>
    %54 = tpu.matmul %48, %39, %cst_28 {dimension_numbers = #tpu.dot_dimension_numbers<[1], [0], [0], [1], [0, 0, 1, 1], [], []>} : vector<5x2xf32>, vector<2x20xf32>, vector<5x20xf32> -> vector<5x20xf32>
    %55 = vector.extract_strided_slice %54 {offsets = [0, 0], sizes = [5, 4], strides = [1, 1]} : vector<5x20xf32> to vector<5x4xf32>
    %56 = arith.mulf %55, %53 : vector<5x4xf32>
    %cst_29 = arith.constant dense<0.000000e+00> : vector<5xf32>
    %57 = vector.multi_reduction <add>, %56, %cst_29 [1] : vector<5x4xf32> to vector<5xf32>
    %58 = vector.shape_cast %57 : vector<5xf32> to vector<5x1xf32>
    %59 = math.roundeven %58 : vector<5x1xf32>
    %60 = arith.fptosi %59 : vector<5x1xf32> to vector<5x1xi32>
    %61 = vector.extract_strided_slice %54 {offsets = [0, 4], sizes = [5, 4], strides = [1, 1]} : vector<5x20xf32> to vector<5x4xf32>
    %62 = arith.mulf %61, %53 : vector<5x4xf32>
    %cst_30 = arith.constant dense<0.000000e+00> : vector<5xf32>
    %63 = vector.multi_reduction <add>, %62, %cst_30 [1] : vector<5x4xf32> to vector<5xf32>
    %64 = vector.shape_cast %63 : vector<5xf32> to vector<5x1xf32>
    %65 = math.roundeven %64 : vector<5x1xf32>
    %66 = arith.fptosi %65 : vector<5x1xf32> to vector<5x1xi32>
    %67 = vector.extract_strided_slice %54 {offsets = [0, 8], sizes = [5, 4], strides = [1, 1]} : vector<5x20xf32> to vector<5x4xf32>
    %68 = arith.mulf %67, %53 : vector<5x4xf32>
    %cst_31 = arith.constant dense<0.000000e+00> : vector<5xf32>
    %69 = vector.multi_reduction <add>, %68, %cst_31 [1] : vector<5x4xf32> to vector<5xf32>
    %70 = vector.shape_cast %69 : vector<5xf32> to vector<5x1xf32>
    %71 = math.roundeven %70 : vector<5x1xf32>
    %72 = arith.fptosi %71 : vector<5x1xf32> to vector<5x1xi32>
    %73 = vector.extract_strided_slice %54 {offsets = [0, 12], sizes = [5, 4], strides = [1, 1]} : vector<5x20xf32> to vector<5x4xf32>
    %74 = arith.mulf %73, %53 : vector<5x4xf32>
    %cst_32 = arith.constant dense<0.000000e+00> : vector<5xf32>
    %75 = vector.multi_reduction <add>, %74, %cst_32 [1] : vector<5x4xf32> to vector<5xf32>
    %76 = vector.shape_cast %75 : vector<5xf32> to vector<5x1xf32>
    %77 = math.roundeven %76 : vector<5x1xf32>
    %78 = arith.fptosi %77 : vector<5x1xf32> to vector<5x1xi32>
    %79 = vector.extract_strided_slice %54 {offsets = [0, 16], sizes = [5, 4], strides = [1, 1]} : vector<5x20xf32> to vector<5x4xf32>
    %80 = arith.mulf %79, %53 : vector<5x4xf32>
    %cst_33 = arith.constant dense<0.000000e+00> : vector<5xf32>
    %81 = vector.multi_reduction <add>, %80, %cst_33 [1] : vector<5x4xf32> to vector<5xf32>
    %82 = vector.shape_cast %81 : vector<5xf32> to vector<5x1xf32>
    %83 = math.roundeven %82 : vector<5x1xf32>
    %84 = arith.fptosi %83 : vector<5x1xf32> to vector<5x1xi32>
    %85 = tpu.iota {dimensions = array<i32: 1>} : vector<5x6xi32>
    %86 = tpu.iota {dimensions = array<i32: 1>} : vector<5x16xi32>
    %87 = vector.broadcast %60 : vector<5x1xi32> to vector<5x6xi32>
    %88 = arith.cmpi eq, %85, %87 : vector<5x6xi32>
    %c0_34 = arith.constant 0 : index
    %c0_35 = arith.constant 0 : index
    %89 = vector.load %arg6[%c0_34, %c0_35] : memref<5x6xf32, #tpu.memory_space<vmem>>, vector<5x6xf32>
    %cst_36 = arith.constant 0.000000e+00 : f32
    %90 = vector.broadcast %cst_36 : f32 to vector<5x6xf32>
    %91 = arith.select %88, %89, %90 : vector<5x6xi1>, vector<5x6xf32>
    %cst_37 = arith.constant dense<0.000000e+00> : vector<5xf32>
    %92 = vector.multi_reduction <add>, %91, %cst_37 [1] : vector<5x6xf32> to vector<5xf32>
    %93 = vector.shape_cast %92 : vector<5xf32> to vector<5x1xf32>
    %94 = vector.broadcast %66 : vector<5x1xi32> to vector<5x16xi32>
    %95 = arith.cmpi eq, %86, %94 : vector<5x16xi32>
    %c0_38 = arith.constant 0 : index
    %c0_39 = arith.constant 0 : index
    %96 = vector.load %arg7[%c0_38, %c0_39] : memref<5x16xf32, #tpu.memory_space<vmem>>, vector<5x16xf32>
    %cst_40 = arith.constant 0.000000e+00 : f32
    %97 = vector.broadcast %cst_40 : f32 to vector<5x16xf32>
    %98 = arith.select %95, %96, %97 : vector<5x16xi1>, vector<5x16xf32>
    %cst_41 = arith.constant dense<0.000000e+00> : vector<5xf32>
    %99 = vector.multi_reduction <add>, %98, %cst_41 [1] : vector<5x16xf32> to vector<5xf32>
    %100 = vector.shape_cast %99 : vector<5xf32> to vector<5x1xf32>
    %101 = vector.broadcast %72 : vector<5x1xi32> to vector<5x16xi32>
    %102 = arith.cmpi eq, %86, %101 : vector<5x16xi32>
    %c0_42 = arith.constant 0 : index
    %c0_43 = arith.constant 0 : index
    %103 = vector.load %arg8[%c0_42, %c0_43] : memref<5x16xf32, #tpu.memory_space<vmem>>, vector<5x16xf32>
    %cst_44 = arith.constant 0.000000e+00 : f32
    %104 = vector.broadcast %cst_44 : f32 to vector<5x16xf32>
    %105 = arith.select %102, %103, %104 : vector<5x16xi1>, vector<5x16xf32>
    %cst_45 = arith.constant dense<0.000000e+00> : vector<5xf32>
    %106 = vector.multi_reduction <add>, %105, %cst_45 [1] : vector<5x16xf32> to vector<5xf32>
    %107 = vector.shape_cast %106 : vector<5xf32> to vector<5x1xf32>
    %c0_i32 = arith.constant 0 : i32
    %108 = vector.broadcast %c0_i32 : i32 to vector<5x1xi32>
    %109 = arith.cmpi sgt, %43, %108 : vector<5x1xi32>
    %c1_i32 = arith.constant 1 : i32
    %110 = vector.broadcast %c1_i32 : i32 to vector<5x1xi32>
    %111 = arith.cmpi eq, %78, %110 : vector<5x1xi32>
    %112 = arith.andi %111, %109 : vector<5x1xi1>
    %113 = arith.extui %112 : vector<5x1xi1> to vector<5x1xi32>
    %114 = arith.sitofp %113 : vector<5x1xi32> to vector<5x1xf32>
    %c1_i32_46 = arith.constant 1 : i32
    %115 = vector.broadcast %c1_i32_46 : i32 to vector<5x1xi32>
    %116 = arith.cmpi eq, %84, %115 : vector<5x1xi32>
    %117 = arith.andi %116, %109 : vector<5x1xi1>
    %118 = arith.extui %117 : vector<5x1xi1> to vector<5x1xi32>
    %119 = arith.sitofp %118 : vector<5x1xi32> to vector<5x1xf32>
    %cst_47 = arith.constant dense<0.000000e+00> : vector<1xf32>
    %120 = vector.multi_reduction <add>, %114, %cst_47 [0] : vector<5x1xf32> to vector<1xf32>
    %121 = vector.shape_cast %120 : vector<1xf32> to vector<1x1xf32>
    %cst_48 = arith.constant 9.99999974E-6 : f32
    %122 = vector.broadcast %cst_48 : f32 to vector<5x1xf32>
    %123 = arith.addf %93, %122 : vector<5x1xf32>
    %124 = math.log %123 : vector<5x1xf32>
    %cst_49 = arith.constant 0.000000e+00 : f32
    %125 = vector.broadcast %cst_49 : f32 to vector<5x1xf32>
    %126 = arith.subf %125, %124 : vector<5x1xf32>
    %127 = arith.mulf %114, %126 : vector<5x1xf32>
    %cst_50 = arith.constant dense<0.000000e+00> : vector<1xf32>
    %128 = vector.multi_reduction <add>, %127, %cst_50 [0] : vector<5x1xf32> to vector<1xf32>
    %129 = vector.shape_cast %128 : vector<1xf32> to vector<1x1xf32>
    %cst_51 = arith.constant 0.000000e+00 : f32
    %130 = vector.broadcast %cst_51 : f32 to vector<1x1xf32>
    %131 = arith.cmpf ogt, %121, %130 : vector<1x1xf32>
    %cst_52 = arith.constant 1.000000e+00 : f32
    %132 = vector.broadcast %cst_52 : f32 to vector<1x1xf32>
    %133 = arith.maximumf %121, %132 : vector<1x1xf32>
    %134 = arith.divf %129, %133 : vector<1x1xf32>
    %cst_53 = arith.constant 0.000000e+00 : f32
    %135 = vector.broadcast %cst_53 : f32 to vector<1x1xf32>
    %136 = arith.select %131, %134, %135 : vector<1x1xi1>, vector<1x1xf32>
    %cst_54 = arith.constant dense<0.000000e+00> : vector<1xf32>
    %137 = vector.multi_reduction <add>, %119, %cst_54 [0] : vector<5x1xf32> to vector<1xf32>
    %138 = vector.shape_cast %137 : vector<1xf32> to vector<1x1xf32>
    %cst_55 = arith.constant 9.99999974E-6 : f32
    %139 = vector.broadcast %cst_55 : f32 to vector<5x1xf32>
    %140 = arith.addf %100, %139 : vector<5x1xf32>
    %141 = math.log %140 : vector<5x1xf32>
    %cst_56 = arith.constant 0.000000e+00 : f32
    %142 = vector.broadcast %cst_56 : f32 to vector<5x1xf32>
    %143 = arith.subf %142, %141 : vector<5x1xf32>
    %144 = arith.mulf %119, %143 : vector<5x1xf32>
    %cst_57 = arith.constant dense<0.000000e+00> : vector<1xf32>
    %145 = vector.multi_reduction <add>, %144, %cst_57 [0] : vector<5x1xf32> to vector<1xf32>
    %146 = vector.shape_cast %145 : vector<1xf32> to vector<1x1xf32>
    %cst_58 = arith.constant 0.000000e+00 : f32
    %147 = vector.broadcast %cst_58 : f32 to vector<1x1xf32>
    %148 = arith.cmpf ogt, %138, %147 : vector<1x1xf32>
    %cst_59 = arith.constant 1.000000e+00 : f32
    %149 = vector.broadcast %cst_59 : f32 to vector<1x1xf32>
    %150 = arith.maximumf %138, %149 : vector<1x1xf32>
    %151 = arith.divf %146, %150 : vector<1x1xf32>
    %cst_60 = arith.constant 0.000000e+00 : f32
    %152 = vector.broadcast %cst_60 : f32 to vector<1x1xf32>
    %153 = arith.select %148, %151, %152 : vector<1x1xi1>, vector<1x1xf32>
    %154 = arith.addf %136, %153 : vector<1x1xf32>
    %cst_61 = arith.constant dense<0.000000e+00> : vector<1xf32>
    %155 = vector.multi_reduction <add>, %119, %cst_61 [0] : vector<5x1xf32> to vector<1xf32>
    %156 = vector.shape_cast %155 : vector<1xf32> to vector<1x1xf32>
    %cst_62 = arith.constant 9.99999974E-6 : f32
    %157 = vector.broadcast %cst_62 : f32 to vector<5x1xf32>
    %158 = arith.addf %107, %157 : vector<5x1xf32>
    %159 = math.log %158 : vector<5x1xf32>
    %cst_63 = arith.constant 0.000000e+00 : f32
    %160 = vector.broadcast %cst_63 : f32 to vector<5x1xf32>
    %161 = arith.subf %160, %159 : vector<5x1xf32>
    %162 = arith.mulf %119, %161 : vector<5x1xf32>
    %cst_64 = arith.constant dense<0.000000e+00> : vector<1xf32>
    %163 = vector.multi_reduction <add>, %162, %cst_64 [0] : vector<5x1xf32> to vector<1xf32>
    %164 = vector.shape_cast %163 : vector<1xf32> to vector<1x1xf32>
    %cst_65 = arith.constant 0.000000e+00 : f32
    %165 = vector.broadcast %cst_65 : f32 to vector<1x1xf32>
    %166 = arith.cmpf ogt, %156, %165 : vector<1x1xf32>
    %cst_66 = arith.constant 1.000000e+00 : f32
    %167 = vector.broadcast %cst_66 : f32 to vector<1x1xf32>
    %168 = arith.maximumf %156, %167 : vector<1x1xf32>
    %169 = arith.divf %164, %168 : vector<1x1xf32>
    %cst_67 = arith.constant 0.000000e+00 : f32
    %170 = vector.broadcast %cst_67 : f32 to vector<1x1xf32>
    %171 = arith.select %166, %169, %170 : vector<1x1xi1>, vector<1x1xf32>
    %172 = arith.addf %154, %171 : vector<1x1xf32>
    %cst_68 = arith.constant 0.000000e+00 : f32
    %173 = vector.broadcast %cst_68 : f32 to vector<5x1xf32>
    %174 = vector.broadcast %172 : vector<1x1xf32> to vector<5x1xf32>
    %175 = arith.addf %173, %174 : vector<5x1xf32>
    %176 = arith.sitofp %60 : vector<5x1xi32> to vector<5x1xf32>
    %177 = arith.sitofp %66 : vector<5x1xi32> to vector<5x1xf32>
    %178 = arith.sitofp %72 : vector<5x1xi32> to vector<5x1xf32>
    %179 = tpu.concatenate %176, %177, %178, %114, %119, %175 in 1 : vector<5x1xf32>, vector<5x1xf32>, vector<5x1xf32>, vector<5x1xf32>, vector<5x1xf32>, vector<5x1xf32> -> vector<5x6xf32>
    %cst_69 = arith.constant 0.000000e+00 : f32
    %180 = vector.broadcast %cst_69 : f32 to vector<5x122xf32>
    %181 = tpu.concatenate %179, %180 in 1 : vector<5x6xf32>, vector<5x122xf32> -> vector<5x128xf32>
    %c0_70 = arith.constant 0 : index
    %c0_71 = arith.constant 0 : index
    %182 = vector.load %arg10[%c0_70, %c0_71] : memref<5x128xf32, #tpu.memory_space<vmem>>, vector<5x128xf32>
    tpu.vector_store %arg10[%c0_70, %c0_71], %181 {strides = array<i32>} : memref<5x128xf32, #tpu.memory_space<vmem>>, vector<5x128xf32>,
    return
  }
}

</mosaic_0001>

<bundles_post_ra>
// kernel: tpu_custom_call.1
= control target key start
LH: loop header
LB: loop body
LE: loop exit
PB: predicated region body
PF: predicated region fallthrough
CT: control target
= control target key end

     0   :  { %vm40_vm0 = vcmask 19456   ;;  %s804_s0 = inlined_call_operand.vmem [shape: f32[2,4,3], index: 0, kind: input, shape index: {}]   ;;  %s805_s1 = inlined_call_operand.vmem [shape: s16[2,3,4], index: 1, kind: input, shape index: {}]   ;;  %s806_s2 = inlined_call_operand.vmem [shape: s8[2,3,4], index: 2, kind: input, shape index: {}]   ;;  %s807_s3 = inlined_call_operand.vmem [shape: s16[2,3,4], index: 3, kind: input, shape index: {}]   ;;  %s808_s4 = inlined_call_operand.vmem [shape: s16[2,3,4], index: 4, kind: input, shape index: {}]   ;;  %s809_s5 = inlined_call_operand.vmem [shape: s8[2,3,4], index: 5, kind: input, shape index: {}]   ;;  %s810_s6 = inlined_call_operand.vmem [shape: f32[5,6], index: 6, kind: input, shape index: {}]   ;;  %s811_s7 = inlined_call_operand.vmem [shape: f32[5,16], index: 7, kind: input, shape index: {}]   ;;  %s812_s8 = inlined_call_operand.vmem [shape: f32[5,16], index: 8, kind: input, shape index: {}]   ;;  %s813_s9 = inlined_call_operand.vmem [shape: s32[5,4], index: 9, kind: input, shape index: {}]   ;;  %s814_s10 = inlined_call_operand.hbm [shape: f32[5,128], index: 10, kind: output, shape index: {}]  }
   0x1   :  { %v38_v0 = vld [vmem:[%s804_s0] sm:$0xf]  ;;  %v39_v1 = vld [vmem:[%s804_s0 + $0x4] sm:$0xf] }
   0x2   :  { %v41_v2 = vsel %vm40_vm0, %v38_v0, -inf }
   0x3   :  { %15 = vsyncpa [#allocation3], 0  ;;  %42 = vmax.xlane.f32.xlu0 %v41_v2  ;;  %v44_v3 = vsel %vm40_vm0, %v39_v1, -inf  ;;  %v47_v4 = vlaneseq  ;;  %v594_v24 = vmov 0   ;;  %v682_v25 = vld [vmem:[%s813_s9] sm:$0x1f] }
   0x4   :  { %557 = vset.pattern.permute.xlu0 %v594_v24  ;;  %v595_v26 = vmov 1   ;;  %v126_v42 = vld [vmem:[%s807_s3] sm:$0x3]  ;;  %vm111_vm6 = vcmask 26624   ;;  %v127_v51 = vld [vmem:[%s807_s3 + $0x2] sm:$0x3] }
   0x5   :  { %v673_v5 = vand.u32 127, %v47_v4  ;;  %558 = vset.pattern.permute.xlu1 %v595_v26  ;;  %v84_v28 = vshrl.u32 %v47_v4, 7  ;;  %v146_v43 = vld [vmem:[%s808_s4] sm:$0x3]  ;;  %v100_v52 = vld [vmem:[%s805_s1 + $0x2] sm:$0x3] }
   0x6   :  { %v99_v44 = vld [vmem:[%s805_s1] sm:$0x3]  ;;  %v147_v57 = vld [vmem:[%s808_s4 + $0x2] sm:$0x3]  ;;  %vm93_vm12 = vcmask 1041409   ;;  %vm599_vm13 = vmmov 0  }
   0x7   :  { %45 = vmax.xlane.f32.xlu0 %v44_v3  ;;  %v87_v32 = vsub.s32 %v673_v5, %v84_v28  ;;  %v166_v59 = vld [vmem:[%s806_s2] sm:$0x1]  ;;  %s600_s14 = smov 12   ;;  %s601_s15 = smov 16   ;;  %vm223_vm14 = vcmask 31744   ;;  %vm225_vm15 = vcmask 64512  }
   0x8   :  { %v190_v63 = vld [vmem:[%s809_s5] sm:$0x1]  ;;  %s602_s16 = smov 120   ;;  %s603_s0 = smov 124  }
   0x9   :  { %s604_s17 = smov 116   ;;  %s605_s9 = smov 112  }
   0xa   :  { %s608_s23 = smov 3   ;;  %s609_s24 = smov [#allocation2]  }
   0xb   :  { %s505_s25 = sshll.u32 %s609_s24, 4  ;;  %s506_s25 = int_to_ptr.vmem [resolvable:$true] %s505_s25 }
   0xc   :  { %s570_s26 = scalar_lea.vmem %s506_s25, 128  ;;  %p575_p1 = scmp.lt.s32.totalorder %s506_s25, %s506_s25 }
   0xd   :  { %p571_p0 = scmp.ne.s32.totalorder %s506_s25, %s570_s26  ;;  %p576_p2 = scmp.lt.s32.totalorder %s570_s26, %s570_s26 }
   0xf   :  { %p577_p3 = por %p576_p2, %p575_p1 }
  0x11   :  { %p578_p4 = pnand %p577_p3, %p571_p0 }
  0x90   :  { %v43_v6 = vpop.xlane.xlu0 %42 }
  0x91   :  { %vm49_vm1 = vcmp.eq.f32.partialorder %v38_v0, %v43_v6 }
  0x92   :  { %v51_v7 = vsel %vm49_vm1, %v673_v5, 3  ;;  %vm229_vm1 = vcmask 130048  }
  0x93   :  { %v53_v8 = vsel %vm40_vm0, %v51_v7, 2147483647  ;;  %v167_v7 = vld [vmem:[%s806_s2 + $0x1] sm:$0x1]  ;;  %s596_s2 = smov 4  }
  0x94   :  { %v46_v9 = vpop.xlane.xlu0 %45  ;;  %v55_v10 = vshra.s32 %v53_v8, 16  ;;  %v54_v16 = vand.u32 65535, %v53_v8  ;;  %v191_v8 = vld [vmem:[%s809_s5 + $0x1] sm:$0x1]  ;;  %s598_s5 = smov 8  }
  0x95   :  { %vm50_vm2 = vcmp.eq.f32.partialorder %v39_v1, %v46_v9 }
  0x96   :  { %v52_v11 = vsel %vm50_vm2, %v673_v5, 3  ;;  %v57_v12 = vcvt.s32.f32 %v55_v10  ;;  %v56_v18 = vcvt.s32.f32 %v54_v16 }
  0x97   :  { %v68_v13 = vsel %vm40_vm0, %v52_v11, 2147483647  ;;  %vm227_vm0 = vcmask 97280  }
  0x98   :  { %58 = vmin.xlane.f32.xlu1 %v57_v12  ;;  %v70_v14 = vshra.s32 %v68_v13, 16  ;;  %v69_v19 = vand.u32 65535, %v68_v13 }
  0x9a   :  { %v72_v15 = vcvt.s32.f32 %v70_v14  ;;  %v71_v22 = vcvt.s32.f32 %v69_v19 }
  0x9c   :  { %73 = vmin.xlane.f32.xlu1 %v72_v15 }
 0x125   :  { %v59_v17 = vpop.xlane.xlu1 %58 }
 0x126   :  { %vm60_vm3 = vcmp.eq.f32.partialorder %v57_v12, %v59_v17  ;;  %v65_v27 = vcvt.f32.s32 %v59_v17 }
 0x127   :  { %v61_v20 = vsel %vm60_vm3, %v56_v18, inf  ;;  %vm249_vm3 = vcmask 1041408  }
 0x128   :  { %62 = vmin.xlane.f32.xlu0 %v61_v20  ;;  %v66_v30 = vshll.u32 %v65_v27, 16 }
 0x129   :  { %v74_v21 = vpop.xlane.xlu1 %73 }
 0x12a   :  { %vm75_vm4 = vcmp.eq.f32.partialorder %v72_v15, %v74_v21  ;;  %v80_v31 = vcvt.f32.s32 %v74_v21 }
 0x12b   :  { %v76_v23 = vsel %vm75_vm4, %v71_v22, inf  ;;  %vm245_vm4 = vcmask 15360  }
 0x12c   :  { %77 = vmin.xlane.f32.xlu1 %v76_v23  ;;  %v81_v36 = vshll.u32 %v80_v31, 16 }
 0x13e   :  { %234 = vperm.xlu0 %557, %v682_v25  }
 0x142   :  { %559 = vset.pattern.permute.xlu0 %v595_v26 }
 0x1b5   :  { %v63_v29 = vpop.xlane.xlu0 %62 }
 0x1b6   :  { %v64_v33 = vcvt.f32.s32 %v63_v29 }
 0x1b8   :  { %v67_v34 = vadd.s32 %v66_v30, %v64_v33 }
 0x1b9   :  { %v78_v35 = vpop.xlane.xlu1 %77 }
 0x1ba   :  { %v88_v37 = vrot.slane %v67_v34, %v87_v32  ;;  %v79_v38 = vcvt.f32.s32 %v78_v35 }
 0x1bc   :  { %v82_v39 = vadd.s32 %v81_v36, %v79_v38  ;;  %vm97_vm5 = vcmp.eq.s32.totalorder %v84_v28, %v88_v37 }
 0x1bd   :  { %v101_v40 = vsel %vm97_vm5, 1, %v594_v24 }
 0x1be   :  { %v92_v41 = vrot.slane %v82_v39, %v87_v32  ;;  %v103_v45 = vpack.c.b16 %v101_v40, %v101_v40 }
 0x1c0   :  { %vm98_vm7 = vcmp.eq.s32.totalorder %v84_v28, %v92_v41  ;;  %vm105_vm8 = vcmp.ne.s16.totalorder %v103_v45, 0  ;;  %v168_v46 = vpack.c.b8 %v103_v45, %v103_v45 }
 0x1c1   :  { %v102_v47 = vsel %vm98_vm7, 1, %v594_v24  ;;  %v107_v48 = vsel %vm105_vm8, %v99_v44, 0  ;;  %v128_v49 = vsel %vm105_vm8, %v126_v42, 0  ;;  %v148_v50 = vsel %vm105_vm8, %v146_v43, 0 }
 0x1c2   :  { %v104_v53 = vpack.c.b16 %v102_v47, %v102_v47  ;;  %v109_v54 = vunpack.c.l.b16 %v107_v48  ;;  %v130_v55 = vunpack.c.l.b16 %v128_v49  ;;  %v150_v56 = vunpack.c.l.b16 %v148_v50 }
 0x1c3   :  { %vm704_vm9 = vnez %v168_v46  ;;  %vm381_vm8 = vcmask 45056  }
 0x1c4   :  { %vm106_vm10 = vcmp.ne.s16.totalorder %v104_v53, 0  ;;  %v112_v60 = vsel %vm111_vm6, %v109_v54, 0  ;;  %v132_v61 = vsel %vm111_vm6, %v130_v55, 0  ;;  %v152_v62 = vsel %vm111_vm6, %v150_v56, 0 }
 0x1c5   :  { %v108_v0 = vsel %vm106_vm10, %v100_v52, 0  ;;  %v129_v1 = vsel %vm106_vm10, %v127_v51, 0  ;;  %v133_v4 = vrot.slane %v132_v61, 4  ;;  %v149_v6 = vsel %vm106_vm10, %v147_v57, 0 }
 0x1c6   :  { %v110_v2 = vunpack.c.l.b16 %v108_v0  ;;  %v131_v3 = vunpack.c.l.b16 %v129_v1  ;;  %v151_v9 = vunpack.c.l.b16 %v149_v6  ;;  %v153_v10 = vrot.slane %v152_v62, 4 }
 0x1c7   :  { %v169_v11 = vpack.c.b8 %v104_v53, %v104_v53  ;;  %v172_v12 = vsel %vm704_vm9, %v166_v59, 0  ;;  %v192_v16 = vsel %vm704_vm9, %v190_v63, 0  ;;  %v113_v17 = vrot.slane %v112_v60, 4 }
 0x1c8   :  { %v119_v13 = vsel %vm111_vm6, %v110_v2, 0  ;;  %v139_v14 = vsel %vm111_vm6, %v131_v3, 0  ;;  %v174_v15 = vunpack.c.0.s8 %v172_v12  ;;  %v159_v19 = vsel %vm111_vm6, %v151_v9, 0 }
 0x1c9   :  { %v140_v18 = vrot.slane %v139_v14, 4  ;;  %vm171_vm11 = vnez %v169_v11  ;;  %v160_v20 = vrot.slane %v159_v19, 4  ;;  %v120_v24 = vrot.slane %v119_v13, 4 }
 0x1ca   :  { %v173_v21 = vsel %vm171_vm11, %v167_v7, 0  ;;  %v176_v22 = vsel %vm111_vm6, %v174_v15, 0  ;;  %v193_v23 = vsel %vm171_vm11, %v191_v8, 0  ;;  %v194_v28 = vunpack.c.0.s8 %v192_v16 }
 0x1cb   :  { %v175_v26 = vunpack.c.0.s8 %v173_v21  ;;  %v177_v27 = vrot.slane %v176_v22, 4  ;;  %v195_v29 = vunpack.c.0.s8 %v193_v23  ;;  %v134_v30 = vadd.s32 %v133_v4, %v132_v61 }
 0x1cc   :  { %v141_v31 = vadd.s32 %v140_v18, %v139_v14  ;;  %v154_v32 = vadd.s32 %v153_v10, %v152_v62  ;;  %v196_v34 = vsel %vm111_vm6, %v194_v28, 0  ;;  %v161_v35 = vadd.s32 %v160_v20, %v159_v19 }
 0x1cd   :  { %v183_v33 = vsel %vm111_vm6, %v175_v26, 0  ;;  %v178_v36 = vadd.s32 %v177_v27, %v176_v22  ;;  %v197_v38 = vrot.slane %v196_v34, 4  ;;  %v203_v39 = vsel %vm111_vm6, %v195_v29, 0 }
 0x1ce   :  { %v184_v37 = vrot.slane %v183_v33, 4  ;;  %v135_v40 = vrot.slane %v134_v30, 2  ;;  %v204_v41 = vrot.slane %v203_v39, 4  ;;  %v142_v42 = vrot.slane %v141_v31, 2 }
 0x1cf   :  { %v155_v43 = vrot.slane %v154_v32, 2  ;;  %v162_v44 = vrot.slane %v161_v35, 2  ;;  %v179_v46 = vrot.slane %v178_v36, 2  ;;  %v198_v48 = vadd.s32 %v197_v38, %v196_v34 }
 0x1d0   :  { %v136_v45 = vadd.s32 %v135_v40, %v134_v30  ;;  %v185_v47 = vadd.s32 %v184_v37, %v183_v33  ;;  %v143_v49 = vadd.s32 %v142_v42, %v141_v31  ;;  %v205_v52 = vadd.s32 %v204_v41, %v203_v39  ;;  %v235_v33 = vpop.permute.xlu0 %234 }
 0x1d1   :  { %v156_v50 = vadd.s32 %v155_v43, %v154_v32  ;;  %v163_v51 = vadd.s32 %v162_v44, %v161_v35  ;;  %v121_v53 = vadd.s32 %v120_v24, %v119_v13  ;;  %v114_v56 = vadd.s32 %v113_v17, %v112_v60 }
 0x1d2   :  { %v137_v54 = vrot.slane %v136_v45, 1  ;;  %v186_v55 = vrot.slane %v185_v47, 2  ;;  %v144_v57 = vrot.slane %v143_v49, 1  ;;  %v206_v59 = vrot.slane %v205_v52, 2 }
 0x1d3   :  { %v164_v58 = vrot.slane %v163_v51, 1  ;;  %v180_v61 = vadd.s32 %v179_v46, %v178_v36  ;;  %v157_v1 = vrot.slane %v156_v50, 1  ;;  %v199_v2 = vrot.slane %v198_v48, 2 }
 0x1d4   :  { %v187_v62 = vadd.s32 %v186_v55, %v185_v47  ;;  %v138_v63 = vadd.s32 %v137_v54, %v136_v45  ;;  %v145_v0 = vadd.s32 %v144_v57, %v143_v49  ;;  %v122_v4 = vrot.slane %v121_v53, 2 }
 0x1d5   :  { %v165_v3 = vadd.s32 %v164_v58, %v163_v51  ;;  %v207_v8 = vadd.s32 %v206_v59, %v205_v52  ;;  %v115_v9 = vrot.slane %v114_v56, 2  ;;  %v158_v10 = vadd.s32 %v157_v1, %v156_v50 }
 0x1d6   :  { %v211_v6 = vsel %vm93_vm12, %v145_v0, %v138_v63  ;;  %v188_v7 = vrot.slane %v187_v62, 1  ;;  %v123_v60 = vadd.s32 %v122_v4, %v121_v53  ;;  %v181_v11 = vrot.slane %v180_v61, 1 }
 0x1d7   :  { %212 = vrot.lane.b32.xlu1 %v211_v6, %s596_s2  ;;  %v200_v12 = vadd.s32 %v199_v2, %v198_v48  ;;  %v116_v13 = vadd.s32 %v115_v9, %v114_v56  ;;  %v214_v15 = vsel %vm93_vm12, %v165_v3, %v158_v10  ;;  %v208_v17 = vrot.slane %v207_v8, 1  ;;  %v386_v6 = vld [vmem:[%s811_s7] sm:$0x1f]  ;;  %s606_s7 = smov 1  }
 0x1d8   :  { %v124_v14 = vrot.slane %v123_v60, 1  ;;  %v189_v16 = vadd.s32 %v188_v7, %v187_v62  ;;  %v597_v19 = vmov 0.0   ;;  %v182_v21 = vadd.s32 %v181_v11, %v180_v61  ;;  %v379_v62 = vld [vmem:[%s810_s6] sm:$0x1f] }
 0x1d9   :  { %v117_v18 = vrot.slane %v116_v13, 1  ;;  %521 = vmatprep.subr.mxu0 %v597_v19  ;;  %v201_v22 = vrot.slane %v200_v12, 1  ;;  %523 = vmatprep.mubr.msk.f32.mxu0 %vm599_vm13, %v597_v19  ;;  %v209_v26 = vadd.s32 %v208_v17, %v207_v8  ;;  %vm236_vm2 = vcmp.eq.s32.totalorder %v673_v5, %v235_v33 }
 0x1da   :  { %v125_v20 = vadd.s32 %v124_v14, %v123_v60  ;;  %v217_v24 = vsel %vm93_vm12, %v189_v16, %v182_v21  ;;  %v513_v40 = vsel %vm236_vm2, 1.0, %v597_v19  ;;  %vm324_vm6 = vcmask 28672  }
 0x1db   :  { %215 = vrot.lane.b32.xlu1 %v214_v15, %s598_s5  ;;  %v118_v23 = vadd.s32 %v117_v18, %v116_v13  ;;  %v202_v28 = vadd.s32 %v201_v22, %v200_v12  ;;  %vm388_vm9 = vcmask 126976   ;;  %vm488_vm10 = vcmask 7168   ;;  %v393_v12 = vld [vmem:[%s812_s8] sm:$0x1f]  ;;  %s607_s8 = smov 2  }
 0x1dc   :  { %vm398_vm13 = vcmp.gt.s32.totalorder %v682_v25, 0 }
 0x1dd   :  { %v210_v27 = vsel %vm93_vm12, %v125_v20, %v118_v23  ;;  %v220_v29 = vsel %vm93_vm12, %v209_v26, %v202_v28 }
 0x1df   :  { %218 = vrot.lane.b32.xlu1 %v217_v24, %s600_s14 }
 0x1e3   :  { %221 = vrot.lane.b32.xlu1 %v220_v29, %s601_s15 }
 0x1e7   :  { %240 = vperm.xlu1 %558, %v682_v25  }
 0x249   :  { %v213_v30 = vpop.permute.xlu1 %212 }
 0x24a   :  { %v224_v34 = vsel %vm223_vm14, %v210_v27, %v213_v30 }
 0x24d   :  { %v216_v31 = vpop.permute.xlu1 %215 }
 0x24e   :  { %v226_v35 = vsel %vm225_vm15, %v224_v34, %v216_v31 }
 0x251   :  { %v219_v32 = vpop.permute.xlu1 %218 }
 0x252   :  { %v228_v36 = vsel %vm227_vm0, %v226_v35, %v219_v32 }
 0x255   :  { %v222_v37 = vpop.permute.xlu1 %221 }
 0x256   :  { %v230_v38 = vsel %vm229_vm1, %v228_v36, %v222_v37  ;;  %vm407_vm1 = vcmask 20496  }
 0x257   :  { %v231_v39 = vcvt.s32.f32 %v230_v38 }
 0x259   :  { %522 = vmatpush3.msk.msra.mxu0 %vm249_vm3, %v231_v39 }
 0x25a   :  { %524 = vmatmul.mubr.msk.f32.vlgmr.msra.gmra.mrb[0].mxu0 %vm245_vm4, %v513_v40 }
 0x266   :  { %v241_v41 = vpop.permute.xlu1 %240 }
 0x267   :  { %vm242_vm5 = vcmp.eq.s32.totalorder %v673_v5, %v241_v41 }
 0x268   :  { %v514_v42 = vsel %vm242_vm5, 1.0, %v597_v19 }
 0x269   :  { %330 = vrot.lane.b32.xlu1 %v514_v42, %s596_s2 }
 0x26d   :  { %342 = vrot.lane.b32.xlu1 %v514_v42, %s598_s5 }
 0x2db   :  { %v331_v43 = vpop.permute.xlu1 %330 }
 0x2df   :  { %v343_v44 = vpop.permute.xlu1 %342 }
 0x32d   :  { %v319_v45 = vpop.f32.mrb[0].mxu0 }
 0x32e   :  { %v525_v46 = vpop.f32.mrb[1].mxu0  ;;  %v345_v47 = vmul.f32 %v343_v44, %v319_v45  ;;  %v333_v48 = vmul.f32 %v331_v43, %v319_v45  ;;  %v323_v49 = vmul.f32 %v514_v42, %v319_v45 }
 0x330   :  { %347 = vrot.lane.b32.xlu0 %v345_v47, %s602_s16  ;;  %335 = vrot.lane.b32.xlu1 %v333_v48, %s603_s0  ;;  %v325_v50 = vsel %vm324_vm6, %v323_v49, 0.0 }
 0x334   :  { %366 = vrot.lane.b32.xlu0 %v514_v42, %s601_s15  ;;  %354 = vrot.lane.b32.xlu1 %v514_v42, %s600_s14 }
 0x358   :  { %326 = vadd.xlane.f32.xlu1 %v325_v50 }
 0x3a2   :  { %v336_v51 = vpop.permute.xlu1 %335  ;;  %v348_v53 = vpop.permute.xlu0 %347 }
 0x3a3   :  { %v338_v52 = vsel %vm324_vm6, %v336_v51, 0.0  ;;  %v350_v56 = vsel %vm324_vm6, %v348_v53, 0.0 }
 0x3a4   :  { %339 = vadd.xlane.f32.xlu0 %v338_v52 }
 0x3a6   :  { %v355_v54 = vpop.permute.xlu1 %354  ;;  %v367_v57 = vpop.permute.xlu0 %366 }
 0x3a7   :  { %v357_v55 = vmul.f32 %v355_v54, %v319_v45  ;;  %v369_v58 = vmul.f32 %v367_v57, %v319_v45 }
 0x3a8   :  { %351 = vadd.xlane.f32.xlu0 %v350_v56 }
 0x3a9   :  { %359 = vrot.lane.b32.xlu1 %v357_v55, %s604_s17 }
 0x3be   :  { %371 = vrot.lane.b32.xlu0 %v369_v58, %s605_s9 }
 0x3e5   :  { %v327_v59 = vpop.xlane.xlu1 %326 }
 0x3e6   :  { %v528_v61 = vcvt.f32.s32 %v327_v59 }
 0x3e8   :  { %vm378_vm7 = vcmp.eq.s32.totalorder %v673_v5, %v528_v61  ;;  %v473_v7 = vcvt.s32.f32 %v528_v61 }
 0x3e9   :  { %v380_v1 = vsel %vm378_vm7, %v379_v62, 0.0  ;;  %vm494_vm7 = vcmask 39936  }
 0x3ea   :  { %v382_v2 = vsel %vm381_vm8, %v380_v1, 0.0  ;;  %vm496_vm8 = vcmask 48128  }
 0x41b   :  { %v360_v63 = vpop.permute.xlu1 %359 }
 0x41c   :  { %v362_v0 = vsel %vm324_vm6, %v360_v63, 0.0 }
 0x41d   :  { %363 = vadd.xlane.f32.xlu1 %v362_v0 }
 0x421   :  { %383 = vadd.xlane.f32.xlu1 %v382_v2 }
 0x431   :  { %v340_v3 = vpop.xlane.xlu0 %339 }
 0x432   :  { %v531_v4 = vcvt.f32.s32 %v340_v3 }
 0x434   :  { %v474_v8 = vcvt.s32.f32 %v531_v4  ;;  %vm385_vm11 = vcmp.eq.s32.totalorder %v673_v5, %v531_v4 }
 0x435   :  { %v352_v9 = vpop.xlane.xlu0 %351  ;;  %v387_v60 = vsel %vm385_vm11, %v386_v6, 0.0 }
 0x436   :  { %v534_v10 = vcvt.f32.s32 %v352_v9  ;;  %v389_v11 = vsel %vm388_vm9, %v387_v60, 0.0  ;;  %v489_v13 = vsel %vm488_vm10, %v473_v7, %v474_v8 }
 0x437   :  { %390 = vadd.xlane.f32.xlu0 %v389_v11 }
 0x438   :  { %v475_v14 = vcvt.s32.f32 %v534_v10  ;;  %vm392_vm12 = vcmp.eq.s32.totalorder %v673_v5, %v534_v10 }
 0x439   :  { %v372_v15 = vpop.permute.xlu0 %371  ;;  %v394_v16 = vsel %vm392_vm12, %v393_v12, 0.0 }
 0x43a   :  { %v374_v17 = vsel %vm324_vm6, %v372_v15, 0.0  ;;  %v395_v18 = vsel %vm388_vm9, %v394_v16, 0.0  ;;  %v776_v20 = vsel %vm245_vm4, %v489_v13, %v475_v14  ;;  %vm491_vm6 = vcmask 23552  }
 0x43b   :  { %375 = vadd.xlane.f32.xlu0 %v374_v17  ;;  %396 = vadd.xlane.f32.xlu1 %v395_v18 }
 0x4aa   :  { %v364_v21 = vpop.xlane.xlu1 %363 }
 0x4ab   :  { %v537_v22 = vcvt.f32.s32 %v364_v21 }
 0x4ad   :  { %vm399_vm15 = vcmp.eq.s32.totalorder %v537_v22, 1 }
 0x4ae   :  { %vm400_vm0 = vmand %vm399_vm15, %vm398_vm13  ;;  %v384_v5 = vpop.xlane.xlu1 %383 }
 0x4af   :  { %v415_v23 = vadd.f32 1e-05, %v384_v5  ;;  %v517_v24 = vsel %vm400_vm0, 1.0, %v597_v19 }
 0x4b0   :  { %477 = vrot.lane.b32.xlu0 %v517_v24, %s606_s7  ;;  %v408_v27 = vsel %vm407_vm1, %v517_v24, 0.0 }
 0x4b1   :  { %560 = vlog2.f32 %v415_v23  ;;  %v409_v29 = vrot.slane %v408_v27, 4 }
 0x4b3   :  { %v410_v31 = vadd.f32 %v409_v29, %v408_v27 }
 0x4b5   :  { %v411_v34 = vrot.slane %v410_v31, 2 }
 0x4b7   :  { %v412_v40 = vadd.f32 %v411_v34, %v410_v31 }
 0x4b9   :  { %v413_v45 = vrot.slane %v412_v40, 1 }
 0x4bb   :  { %v561_v26 = vpop.eup %560  ;;  %v414_v51 = vadd.f32 %v413_v45, %v412_v40 }
 0x4bc   :  { %v417_v28 = vmul.f32 0.6931472, %v561_v26 }
 0x4bd   :  { %vm427_vm4 = vcmp.gt.f32.partialorder %v414_v51, 0.0 }
 0x4be   :  { %v418_v30 = vsub.f32 0.0, %v417_v28 }
 0x4c0   :  { %v419_v35 = vmul.f32 %v517_v24, %v418_v30 }
 0x4c2   :  { %v420_v41 = vsel %vm407_vm1, %v419_v35, 0.0 }
 0x4c3   :  { %v421_v43 = vrot.slane %v420_v41, 4 }
 0x4c4   :  { %v391_v32 = vpop.xlane.xlu0 %390 }
 0x4c5   :  { %v439_v33 = vadd.f32 1e-05, %v391_v32  ;;  %v422_v49 = vadd.f32 %v421_v43, %v420_v41 }
 0x4c7   :  { %562 = vlog2.f32 %v439_v33  ;;  %v423_v25 = vrot.slane %v422_v49, 2 }
 0x4c8   :  { %v376_v36 = vpop.xlane.xlu0 %375  ;;  %v397_v37 = vpop.xlane.xlu1 %396 }
 0x4c9   :  { %v540_v38 = vcvt.f32.s32 %v376_v36  ;;  %v457_v39 = vadd.f32 1e-05, %v397_v37  ;;  %v424_v0 = vadd.f32 %v423_v25, %v422_v49 }
 0x4cb   :  { %vm403_vm2 = vcmp.eq.s32.totalorder %v540_v38, 1  ;;  %564 = vlog2.f32 %v457_v39  ;;  %v425_v8 = vrot.slane %v424_v0, 1 }
 0x4cc   :  { %vm404_vm3 = vmand %vm403_vm2, %vm398_vm13 }
 0x4cd   :  { %v518_v42 = vsel %vm404_vm3, 1.0, %v597_v19  ;;  %v428_v19 = vmax.f32 %v414_v51, 1.0  ;;  %v426_v11 = vadd.f32 %v425_v8, %v424_v0 }
 0x4ce   :  { %v432_v44 = vsel %vm407_vm1, %v518_v42, 0.0  ;;  %481 = vrot.lane.b32.xlu1 %v518_v42, %s607_s8 }
 0x4cf   :  { %v433_v46 = vrot.slane %v432_v44, 4  ;;  %566 = vrcp.f32 %v428_v19 }
 0x4d1   :  { %v563_v47 = vpop.eup %562  ;;  %v434_v48 = vadd.f32 %v433_v46, %v432_v44 }
 0x4d2   :  { %v441_v50 = vmul.f32 0.6931472, %v563_v47 }
 0x4d3   :  { %v435_v52 = vrot.slane %v434_v48, 2 }
 0x4d4   :  { %v442_v53 = vsub.f32 0.0, %v441_v50 }
 0x4d5   :  { %v565_v54 = vpop.eup %564  ;;  %v436_v55 = vadd.f32 %v435_v52, %v434_v48 }
 0x4d6   :  { %v443_v56 = vmul.f32 %v518_v42, %v442_v53  ;;  %v459_v57 = vmul.f32 0.6931472, %v565_v54 }
 0x4d7   :  { %v437_v58 = vrot.slane %v436_v55, 1 }
 0x4d8   :  { %v444_v59 = vsel %vm407_vm1, %v443_v56, 0.0  ;;  %v460_v61 = vsub.f32 0.0, %v459_v57 }
 0x4d9   :  { %v445_v62 = vrot.slane %v444_v59, 4  ;;  %v438_v63 = vadd.f32 %v437_v58, %v436_v55  ;;  %v567_v14 = vpop.eup %566 }
 0x4da   :  { %v461_v1 = vmul.f32 %v518_v42, %v460_v61  ;;  %v430_v16 = vmul.f32 %v567_v14, %v426_v11 }
 0x4db   :  { %v446_v2 = vadd.f32 %v445_v62, %v444_v59  ;;  %v452_v3 = vmax.f32 %v438_v63, 1.0  ;;  %vm451_vm5 = vcmp.gt.f32.partialorder %v438_v63, 0.0 }
 0x4dc   :  { %v462_v4 = vsel %vm407_vm1, %v461_v1, 0.0  ;;  %v431_v23 = vsel %vm427_vm4, %v430_v16, 0.0 }
 0x4dd   :  { %v447_v6 = vrot.slane %v446_v2, 2  ;;  %v463_v7 = vrot.slane %v462_v4, 4  ;;  %568 = vrcp.f32 %v452_v3 }
 0x4df   :  { %v448_v9 = vadd.f32 %v447_v6, %v446_v2  ;;  %v464_v60 = vadd.f32 %v463_v7, %v462_v4 }
 0x4e1   :  { %v465_v10 = vrot.slane %v464_v60, 2  ;;  %v449_v12 = vrot.slane %v448_v9, 1 }
 0x4e3   :  { %v466_v13 = vadd.f32 %v465_v10, %v464_v60  ;;  %v450_v17 = vadd.f32 %v449_v12, %v448_v9 }
 0x4e5   :  { %v467_v15 = vrot.slane %v466_v13, 1 }
 0x4e7   :  { %v569_v18 = vpop.eup %568  ;;  %v468_v21 = vadd.f32 %v467_v15, %v466_v13 }
 0x4e8   :  { %v454_v22 = vmul.f32 %v569_v18, %v450_v17 }
 0x4e9   :  { %v469_v5 = vmul.f32 %v569_v18, %v468_v21 }
 0x4ea   :  { %v455_v24 = vsel %vm451_vm5, %v454_v22, 0.0 }
 0x4eb   :  { %v456_v26 = vadd.f32 %v455_v24, %v431_v23  ;;  %v470_v27 = vsel %vm451_vm5, %v469_v5, 0.0 }
 0x4ed   :  { %v471_v28 = vadd.f32 %v470_v27, %v456_v26 }
 0x4ef   :  { %485 = vrot.lane.b32.xlu1 %v471_v28, %s608_s23 }
 0x522   :  { %v478_v29 = vpop.permute.xlu0 %477 }
 0x523   :  { %v492_v31 = vsel %vm491_vm6, %v776_v20, %v478_v29 }
 0x540   :  { %v482_v30 = vpop.permute.xlu1 %481 }
 0x541   :  { %v493_v32 = vsel %vm223_vm14, %v492_v31, %v482_v30 }
 0x561   :  { %v486_v33 = vpop.permute.xlu1 %485 }
 0x562   :  { %v495_v34 = vsel %vm494_vm7, %v493_v32, %v486_v33 }
 0x563   :  { %v497_v35 = vsel %vm496_vm8, %v495_v34, 0.0 }
 0x564   :  { %498 = vst [vmem:[#allocation2] sm:$0x1f] %v497_v35 }
 0x565   :  { %581 = shalt.err (!%p578_p4)
}
 0x566   :  { %s582_s29 = scalar_lea.hbm %s814_s10, 128 }
 0x567   :  { %p583_p5 = scmp.ne.s32.totalorder %s814_s10, %s582_s29  ;;  %p586_p6 = scmp.lt.u32.totalorder %s582_s29, %s814_s10 }
 0x569   :  { %p588_p7 = pnand %p586_p6, %p583_p5 }
 0x56b   :  { %591 = shalt.err (!%p588_p7)
}
 0x56c   :  { %508 = dma.vmem_to_hbm [thread:$0]  %s506_s25, 128, %s814_s10, [#allocation3]  }
 0x56d   :  { %592 = dma.done.wait [#allocation3], 128  }
 0x56e   :  { %593 = vsyncadd [#allocation3], 4294967168 }
 0x56f   :  { %512 = vsyncpa [#allocation3], 1 }

</bundles_post_ra>
